<compile_context>
chip_gen: v7x
topology: tpu7x:2x2x1
jax: 0.10.0
libtpu: 0.0.40
codegen_flags: <defaults>
</compile_context>

<pallas_src>
import jax
import jax.numpy as jnp
from jax.experimental import pallas as pl
from jax.experimental.pallas import tpu as pltpu


def _shuffle_kernel(shifts_ref, x_ref, o_ref):
    # shifts_ref: SMEM int32[2] = (shift_up % H, shift_left % W), scalar-prefetched.
    su = shifts_ref[0]
    sl = shifts_ref[1]
    # torch.cat((x[..., -s:, :], x[..., :-s, :]), dim=2) == circular roll by s along H
    rolled = pltpu.roll(x_ref[...], su, axis=1)   # sublane (H) roll, whole tile at once
    # torch.cat((x[..., -s:], x[..., :-s]), dim=3) == circular roll by s along W
    o_ref[...] = pltpu.roll(rolled, sl, axis=2)   # lane (W) roll, whole tile at once


_MIN_GRID = 4  # >= 2 steps per TensorCore on v7x; keeps prologue/epilogue overlapped


def _pick_tiling(bc, h, w, itemsize):
    """Pick maps-per-step (tile_bc), grid length and a scoped-VMEM limit."""
    per_map = max(1, h * w * itemsize)
    try:
        vmem_cap = int(pltpu.get_tpu_info().vmem_capacity_bytes)
    except Exception:
        vmem_cap = 128 * 1024 * 1024
    # v7x (64 MiB VMEM, ~3.2 TB/s HBM) only amortizes the ~0.35us per-step overhead with
    # bigger tiles; v5e/v6e (128 MiB physical VMEM, lower HBM BW) are happy at ~4 MiB.
    target_bytes = 6 * 1024 * 1024 if vmem_cap <= 64 * 1024 * 1024 else 4 * 1024 * 1024

    tile_bc = max(1, min(bc, target_bytes // per_map))
    grid = pl.cdiv(bc, tile_bc)
    if grid < _MIN_GRID and bc >= 2:
        tile_bc = max(1, pl.cdiv(bc, min(bc, _MIN_GRID)))
        grid = pl.cdiv(bc, tile_bc)

    tile_bytes = tile_bc * per_map
    # Double-buffered input + output ~= 4x tile; add headroom, stay under physical VMEM.
    vmem_limit = min(int(vmem_cap * 3 // 4),
                     max(32 * 1024 * 1024, 5 * tile_bytes + 4 * 1024 * 1024))
    return tile_bc, grid, vmem_limit


def shuffle_layer(x, shift_up=None, shift_left=None, shuffle=True, training=True,
                  key=None):
    """JAX/Pallas equivalent of ShuffleLayer.forward on NCHW input.

    shift_up / shift_left may be Python ints or traced scalars; if None they are
    sampled on-device (uniform in [0, dim], matching random.randint(0, dim)).
    """
    if not (training and shuffle):
        return x
    b, c, h, w = x.shape

    if shift_up is None or shift_left is None:
        if key is None:
            key = jax.random.PRNGKey(0)
        k_up, k_left = jax.random.split(key)
        if shift_up is None:
            shift_up = jax.random.randint(k_up, (), 0, h + 1)     # randint(0, h) incl.
        if shift_left is None:
            shift_left = jax.random.randint(k_left, (), 0, w + 1)

    # shift == 0 or == dim size is an identity roll in the PyTorch code; mod handles it.
    su = jnp.asarray(shift_up, dtype=jnp.int32) % h
    sl = jnp.asarray(shift_left, dtype=jnp.int32) % w
    shifts = jnp.stack([su, sl]).astype(jnp.int32)   # stays on device (no host sync)

    bc = b * c
    tile_bc, grid, vmem_limit = _pick_tiling(bc, h, w, x.dtype.itemsize)

    # TODO(synk): for small-spatial maps (7x7 / 14x14) this NCHW layout pads each map to
    # an (8,128) tile; an NHWC (C-on-lanes) variant would keep stores lane-dense.
    x2 = x.reshape(bc, h, w)
    out = pl.pallas_call(
        _shuffle_kernel,
        out_shape=jax.ShapeDtypeStruct((bc, h, w), x.dtype),
        grid_spec=pltpu.PrefetchScalarGridSpec(
            num_scalar_prefetch=1,
            grid=(grid,),
            in_specs=[pl.BlockSpec((tile_bc, h, w), lambda i, shifts_r: (i, 0, 0))],
            out_specs=pl.BlockSpec((tile_bc, h, w), lambda i, shifts_r: (i, 0, 0)),
        ),
        compiler_params=pltpu.CompilerParams(
            dimension_semantics=("parallel",),
            vmem_limit_bytes=vmem_limit),
    )(shifts, x2)
    return out.reshape(b, c, h, w)


def _ref_shuffle(x, shift_up, shift_left):
    # Exact mirror of the PyTorch cat-based shifting (also handles shift == 0).
    x = jnp.concatenate((x[:, :, -shift_up:, :], x[:, :, :-shift_up, :]), axis=2)
    x = jnp.concatenate((x[:, :, :, -shift_left:], x[:, :, :, :-shift_left]), axis=3)
    return x


if __name__ == "__main__":
    key = jax.random.PRNGKey(0)

    # 1) batch=2, channels=4, H=16, W=128: explicit shifts vs PyTorch-semantics reference
    x = jax.random.normal(key, (2, 4, 16, 128), dtype=jnp.float32)
    shift_up, shift_left = 5, 37
    y = jax.block_until_ready(
        shuffle_layer(x, shift_up=shift_up, shift_left=shift_left,
                      shuffle=True, training=True))
    ref = _ref_shuffle(x, shift_up, shift_left)
    assert y.shape == x.shape and y.dtype == x.dtype
    assert jnp.array_equal(y, ref), "Pallas shuffle does not match PyTorch semantics"

    # 2) zero / full-size shift edge case (randint may return 0 or the dim size).
    y0 = jax.block_until_ready(
        shuffle_layer(x, shift_up=0, shift_left=x.shape[3], training=True))
    assert jnp.array_equal(y0, x)

    # 3) ragged B*C (10 maps -> masked, partially-filled last grid block).
    xr = jax.random.normal(jax.random.PRNGKey(2), (2, 5, 16, 128), dtype=jnp.float32)
    yr = jax.block_until_ready(shuffle_layer(xr, shift_up=3, shift_left=100,
                                             training=True))
    assert jnp.array_equal(yr, _ref_shuffle(xr, 3, 100)), "ragged-BC block mismatch"

    # 4) fully on-device path: shifts sampled from a traced key, whole layer under jit
    #    (no host round-trip). A circular roll is a permutation, so per-map sums match.
    jitted = jax.jit(lambda xx, kk: shuffle_layer(xx, key=kk))
    ys = jax.block_until_ready(jitted(x, jax.random.PRNGKey(1)))
    assert ys.shape == x.shape and ys.dtype == x.dtype
    assert jnp.allclose(ys.sum(axis=(2, 3)), x.sum(axis=(2, 3)), rtol=1e-5, atol=1e-4)

    # 5) eval / shuffle=False path is identity (no kernel).
    assert jnp.array_equal(shuffle_layer(x, training=False), x)

    print("KERNEL_OK")
</pallas_src>

<mosaic_0001>
module attributes {stable_mosaic.version = 11 : i64} {
  func.func @_shuffle_kernel(%arg0: i32, %arg1: memref<2xi32, #tpu.memory_space<smem>>, %arg2: memref<2x16x128xf32, #tpu.memory_space<vmem>>, %arg3: memref<2x16x128xf32, #tpu.memory_space<vmem>>) attributes {dimension_semantics = [#tpu.dimension_semantics<parallel>], iteration_bounds = array<i64: 4>, scalar_prefetch = 1 : i64, scratch_operands = 0 : i64, tpu.core_type = #tpu.core_type<tc>, window_params = [{transform_indices = @transform_0, window_bounds = array<i64: 2, 16, 128>}, {transform_indices = @transform_1, window_bounds = array<i64: 2, 16, 128>}]} {
    %c0 = arith.constant 0 : index
    %0 = memref.load %arg1[%c0] : memref<2xi32, #tpu.memory_space<smem>>
    %c1 = arith.constant 1 : index
    %1 = memref.load %arg1[%c1] : memref<2xi32, #tpu.memory_space<smem>>
    %c0_0 = arith.constant 0 : index
    %c0_1 = arith.constant 0 : index
    %c0_2 = arith.constant 0 : index
    %2 = vector.load %arg2[%c0_0, %c0_1, %c0_2] : memref<2x16x128xf32, #tpu.memory_space<vmem>>, vector<2x16x128xf32>
    %3 = tpu.dynamic_rotate %2 by %0 dim 1 : vector<2x16x128xf32>, i32 -> vector<2x16x128xf32>
    %4 = tpu.dynamic_rotate %3 by %1 dim 2 : vector<2x16x128xf32>, i32 -> vector<2x16x128xf32>
    %c0_3 = arith.constant 0 : index
    %c0_4 = arith.constant 0 : index
    %c0_5 = arith.constant 0 : index
    %5 = vector.load %arg3[%c0_3, %c0_4, %c0_5] : memref<2x16x128xf32, #tpu.memory_space<vmem>>, vector<2x16x128xf32>
    tpu.vector_store %arg3[%c0_3, %c0_4, %c0_5], %4 {strides = array<i32>} : memref<2x16x128xf32, #tpu.memory_space<vmem>>, vector<2x16x128xf32>,
    return
  }
  func.func @transform_0(%arg0: i32, %arg1: memref<2xi32, #tpu.memory_space<smem>>) -> (i32, i32, i32) {
    %c0_i32 = arith.constant 0 : i32
    %c0_i32_0 = arith.constant 0 : i32
    %c0_i32_1 = arith.constant 0 : i32
    return %arg0, %c0_i32, %c0_i32_0 : i32, i32, i32
  }
  func.func @transform_1(%arg0: i32, %arg1: memref<2xi32, #tpu.memory_space<smem>>) -> (i32, i32, i32) {
    %c0_i32 = arith.constant 0 : i32
    %c0_i32_0 = arith.constant 0 : i32
    %c0_i32_1 = arith.constant 0 : i32
    return %arg0, %c0_i32, %c0_i32_0 : i32, i32, i32
  }
}

</mosaic_0001>

<bundles_post_ra>
// kernel: tpu_custom_call.1
= control target key start
LH: loop header
LB: loop body
LE: loop exit
PB: predicated region body
PF: predicated region fallthrough
CT: control target
= control target key end

     0   :  { %s658_s0 = inlined_call_operand.hbm [shape: s32[2], index: 0, kind: input, shape index: {}]   ;;  %s659_s1 = inlined_call_operand.hbm [shape: f32[8,16,128], index: 1, kind: input, shape index: {}]   ;;  %s660_s2 = inlined_call_operand.hbm [shape: f32[8,16,128], index: 2, kind: output, shape index: {}]  }
   0x1   :  { %s350_s11 = scalar_lea.hbm %s658_s0, 16 }
   0x2   :  { %p351_p0 = scmp.ne.s32.totalorder %s658_s0, %s350_s11  ;;  %p354_p1 = scmp.lt.u32.totalorder %s350_s11, %s658_s0 }
   0x4   :  { %p356_p2 = pnand %p354_p1, %p351_p0 }
   0x6   :  { %359 = shalt.err (!%p356_p2)  }
   0x7   :  { %s460_s16 = smov [#allocation3]  }
   0x8   :  { %8 = dma.hbm_to_smem %s658_s0, 16, %s460_s16, [#allocation2] }
   0x9   :  { %434 = dma.done.wait [#allocation2], 16 }
   0xa   :  { %435 = vsyncadd [#allocation2], 4294967280 }
   0xb   :  { %10 = sfence }
   0xc   :  { %11 = vsyncpa [#allocation5], 0 }
   0xd   :  { %13 = vsyncpa [#allocation5 + $0x1], 0 }
   0xe   :  { %14 = vsyncpa [#allocation6], 0 }
   0xf   :  { %16 = vsyncpa [#allocation6 + $0x1], 0  ;;  %s494_s19 = smov 0   ;;  %s496_s20 = smov 0  }
  0x10   :  { %s498_s21 = smov 0   ;;  %s500_s22 = smov 0  }
  0x11 LB: > { %s515_s0 = sadd.s32 4294967295, %s458_s22   ;;  %s278_s23 = sadd.s32 4294967294, %s458_s22   ;;  %s458_s22 = sphi %s500_s22, %s672_s22   ;;  %s454_s21 = sphi %s498_s21, %s671_s21   ;;  %s450_s20 = sphi %s496_s20, %s670_s20   ;;  %s446_s19 = sphi %s494_s19, %s669_s19  }
  0x12   : > { %s519_s24 = sadd.s32 1, %s458_s22   ;;  %s29_s25 = sadd.s32 1, %s454_s21 }
  0x13   : > { %s26_s26 = ssub.s32 %s458_s22, %s519_s24  ;;  %p36_p3 = scmp.ne.s32.totalorder %s454_s21, %s450_s20 }
  0x14   : > { %p27_p4 = scmp.eq.s32.totalorder %s26_s26, 0  ;;  %p37_p5 = scmp.eq.s32.totalorder %s458_s22, 0 }
  0x15   : > { %p42_p6 = scmp.ne.s32.totalorder %s450_s20, %s446_s19  ;;  %p43_p7 = scmp.eq.s32.totalorder %s515_s0, 0 }
  0x16   : > { %s531_s27 = scalar_select %p27_p4, %s454_s21, %s29_s25  }
  0x17   : > { %p533_p8 = por %p37_p5, %p36_p3  ;;  %p537_p9 = por %p43_p7, %p42_p6 }
  0x18   : > { %p66_p10 = scmp.eq.s32.totalorder %s515_s0, 3  ;;  %p72_p11 = scmp.eq.s32.totalorder %s278_s23, 3 }
  0x19   : > { %p311_p12 = scmp.lt.s32.totalorder %s458_s22, 4  ;;  %s92_s4 = sand.u32 1, %s454_s21  }
  0x1a   : > { %p543_p13 = por %p66_p10, %p36_p3  ;;  %p547_p0 = por %p72_p11, %p42_p6 }
  0x1b   : > { %s296_s5 = sshll.u32 %s458_s22, 9  ;;  %s281_s6 = sshll.u32 %s92_s4, 5 }
  0x1c   : > { %s664_s30 = scalar_select %p543_p13, 1, 0 }
  0x1d   : > { %s665_s3 = scalar_select %p547_p0, 1, 0 }
  0x1e   : > { %s556_s9 = scalar_lea.hbm %s659_s1, %s296_s5  ;;  %s96_s10 = scalar_lea.vmem [#allocation4], %s281_s6 }
  0x1f   : > { %s104_s11 = sshll.u32 %s96_s10, 4  ;;  %p560_p1 = pnand %p311_p12, %p533_p8  ;;  %s564_s11 = int_to_ptr.vmem [resolvable:$true] %s104_s11 }
  0x20   : > { %s566_s13 = scalar_lea.sflag [#allocation5], %s92_s4  ;;  %s360_s14 = scalar_lea.hbm %s556_s9, 512 }
  0x21   : > { %p361_p2 = scmp.ne.s32.totalorder %s556_s9, %s360_s14  ;;  %p362_p3 = pneg %p560_p1 }
  0x22   : > { %s365_s17 = scalar_lea.hbm %s659_s1, 2048  ;;  %p366_p6 = scmp.lt.u32.totalorder %s556_s9, %s659_s1 }
  0x23   : > { %p363_p4 = pnand %p362_p3, %p361_p2  ;;  %p367_p7 = scmp.lt.u32.totalorder %s365_s17, %s360_s14 }
  0x24   : > { %p369_p10 = scmp.lt.u32.totalorder %s360_s14, %s556_s9 }
  0x25   : > { %p364_p5 = pneg %p363_p4  ;;  %p368_p8 = por %p367_p7, %p366_p6 }
  0x27   : > { %p370_p11 = por %p369_p10, %p368_p8 }
  0x29   : > { %p371_p12 = pnand %p370_p11, %p364_p5 }
  0x2b   : > { %374 = shalt.err (!%p371_p12)
}
  0x2c   : > { %s375_s25 = scalar_lea.vmem %s564_s11, 512  ;;  %s461_s26 = smov [#allocation4]  }
  0x2d   : > { %p376_p2 = scmp.ne.s32.totalorder %s564_s11, %s375_s25  ;;  %s380_s28 = sshll.u32 %s461_s26, 4  ;;  %s381_s28 = int_to_ptr.vmem [resolvable:$false] %s380_s28 }
  0x2e   : > { %s382_s4 = scalar_lea.vmem %s381_s28, 1024  ;;  %p383_p13 = scmp.lt.s32.totalorder %s564_s11, %s381_s28 }
  0x2f   : > { %p378_p4 = pnand %p376_p2, %p362_p3  ;;  %p384_p6 = scmp.lt.s32.totalorder %s382_s4, %s375_s25 }
  0x31   : > { %p379_p0 = pneg %p378_p4  ;;  %p385_p7 = por %p384_p6, %p383_p13 }
  0x33   : > { %p386_p8 = pnand %p385_p7, %p379_p0 }
  0x35   : > { %389 = shalt.err (!%p386_p8)
}
  0x36   : > { %s462_s5 = smov 128   ;;  %s463_s6 = smov 8  }
  0x37   : > { %306 = dma.hbm_to_vmem [thread:$0]  (!%p560_p1), %s556_s9, 512, %s564_s11, %s566_s13, %s462_s5, %s462_s5, %s463_s6  }
  0x38   : > { %p285_p3 = scmp.ge.s32.totalorder %s458_s22, 1  ;;  %p112_p5 = scmp.lt.s32.totalorder %s458_s22, 5 }
  0x3a   : > { %p113_p10 = pnand %p285_p3, %p112_p5 }
  0x3b   : > { %s597_s7 = sand.u32 (!%p113_p10), 1, %s450_s20  }
  0x3c   : > { %116 = sbr.rel (%p113_p10) target bundleno = 217 (0xd9), region = 24  ;;  %s286_s8 = sshll.u32 (!%p113_p10), %s597_s7, 5 }
  0x3d   : > { %s119_s10 = scalar_lea.sflag (!%p113_p10), [#allocation5], %s597_s7  ;;  %s122_s14 = scalar_lea.vmem (!%p113_p10), [#allocation4], %s286_s8 }
  0x43   : > { %437 = dma.done.wait (%p537_p9), %s119_s10, 512  }
  0x44   : > { %439 = vsyncadd (%p537_p9), %s119_s10, 4294966784  ;;  %s143_s9 = sld [smem:[#allocation3]]  ;;  %v162_v0 = vlaneseq  ;;  %s288_s11 = sld [smem:[#allocation3 + $0x1]]  ;;  %v147_v2 = vld [vmem:[%s122_s14 + $0x10] sm:$0xff]  ;;  %v148_v3 = vld [vmem:[%s122_s14 + $0x18] sm:$0xff] }
  0x45   : > { %v145_v4 = vld [vmem:[%s122_s14] sm:$0xff]  ;;  %v146_v6 = vld [vmem:[%s122_s14 + $0x8] sm:$0xff]  ;;  %s140_s18 = scalar_lea.vmem [#allocation7], %s286_s8  ;;  %s298_s25 = sshll.u32 %s515_s0, 9 }
  0x46   : > { %v163_v1 = vshrl.u32 %v162_v0, 7  ;;  %s205_s23 = sshll.u32 %s140_s18, 4  ;;  %s615_s4 = scalar_lea.hbm %s660_s2, %s298_s25  ;;  %s610_s23 = int_to_ptr.vmem [resolvable:$true] %s205_s23 }
  0x47   : > { %s191_s5 = scalar_lea.sflag [#allocation6], %s597_s7  ;;  %s390_s6 = scalar_lea.vmem %s610_s23, 512 }
  0x48   : > { %p391_p9 = scmp.ne.s32.totalorder %s610_s23, %s390_s6  ;;  %p667_p13 = scmp.ne.s32.totalorder %s664_s30, 0 }
  0x49   : > { %s464_s0 = smov [#allocation7]  }
  0x4a   : > { %s149_s12 = sand.u32 15, %s143_s9   ;;  %s176_s29 = sand.u32 127, %s288_s11  }
  0x4b   : > { %s150_s13 = sand.u32 7, %s149_s12   ;;  %s151_s15 = sshrl.u32 %s149_s12, 3 }
  0x4c   : > { %s152_s16 = ssub.s32 8, %s150_s13  ;;  %v161_v5 = vstv %s150_s13  ;;  %s169_s17 = sand.u32 1, %s151_s15 }
  0x4d   : > { %v153_v7 = vstv %s152_s16  ;;  %vm164_vm0 = vcmp.lt.s32.totalorder %v163_v1, %v161_v5  ;;  %v170_v8 = vstv %s169_s17  ;;  %p392_p0 = pnand %p391_p9, %p667_p13  ;;  %s394_s8 = sshll.u32 %s464_s0, 4  ;;  %s395_s8 = int_to_ptr.vmem [resolvable:$false] %s394_s8 }
  0x4e   : > { %v156_v9 = vrot.slane %v147_v2, %v153_v7  ;;  %v160_v10 = vrot.slane %v148_v3, %v153_v7  ;;  %vm171_vm1 = vcmp.ne.s32.totalorder %v170_v8, 0  ;;  %v154_v11 = vrot.slane %v145_v4, %v153_v7  ;;  %s396_s10 = scalar_lea.vmem %s395_s8, 1024  ;;  %p397_p11 = scmp.lt.s32.totalorder %s610_s23, %s395_s8 }
  0x4f   : > { %v158_v12 = vrot.slane %v146_v6, %v153_v7  ;;  %p393_p1 = pneg %p392_p0  ;;  %p398_p12 = scmp.lt.s32.totalorder %s396_s10, %s390_s6 }
  0x50   : > { %v166_v13 = vsel %vm164_vm0, %v156_v9, %v160_v10  ;;  %v168_v14 = vsel %vm164_vm0, %v160_v10, %v156_v9 }
  0x51   : > { %v174_v15 = vsel %vm171_vm1, %v166_v13, %v168_v14  ;;  %v165_v16 = vsel %vm164_vm0, %v154_v11, %v158_v12  ;;  %v167_v17 = vsel %vm164_vm0, %v158_v12, %v154_v11  ;;  %v175_v19 = vsel %vm171_vm1, %v168_v14, %v166_v13  ;;  %p399_p2 = por %p398_p12, %p397_p11 }
  0x52   : > { %182 = vrot.lane.b32.xlu1 %v174_v15, %s176_s29  ;;  %v172_v18 = vsel %vm171_vm1, %v165_v16, %v167_v17  ;;  %v173_v20 = vsel %vm171_vm1, %v167_v17, %v165_v16 }
  0x53   : > { %178 = vrot.lane.b32.xlu0 %v172_v18, %s176_s29  ;;  %p400_p4 = pnand %p399_p2, %p393_p1 }
  0x56   : > { %184 = vrot.lane.b32.xlu1 %v175_v19, %s176_s29 }
  0x57   : > { %180 = vrot.lane.b32.xlu0 %v173_v20, %s176_s29 }
  0xc4   : > { %v183_v21 = vpop.permute.xlu1 %182 }
  0xc5   : > { %188 = vst [vmem:[%s140_s18 + $0x10] sm:$0xff] %v183_v21  ;;  %v179_v22 = vpop.permute.xlu0 %178 }
  0xc6   : > { %186 = vst [vmem:[%s140_s18] sm:$0xff] %v179_v22 }
  0xc8   : > { %v185_v23 = vpop.permute.xlu1 %184 }
  0xc9   : > { %189 = vst [vmem:[%s140_s18 + $0x18] sm:$0xff] %v185_v23  ;;  %v181_v24 = vpop.permute.xlu0 %180 }
  0xca   : > { %187 = vst [vmem:[%s140_s18 + $0x8] sm:$0xff] %v181_v24 }
  0xcb   : > { %403 = shalt.err (!%p400_p4)
}
  0xcc   : > { %s404_s14 = scalar_lea.hbm %s615_s4, 512  ;;  %s408_s12 = scalar_lea.hbm %s660_s2, 2048 }
  0xcd   : > { %p405_p6 = scmp.ne.s32.totalorder %s615_s4, %s404_s14  ;;  %p409_p3 = scmp.lt.u32.totalorder %s615_s4, %s660_s2 }
  0xce   : > { %p410_p5 = scmp.lt.u32.totalorder %s408_s12, %s404_s14  ;;  %p412_p9 = scmp.lt.u32.totalorder %s404_s14, %s615_s4 }
  0xcf   : > { %p406_p7 = pnand %p405_p6, %p667_p13 }
  0xd0   : > { %p411_p10 = por %p410_p5, %p409_p3 }
  0xd1   : > { %p407_p8 = pneg %p406_p7 }
  0xd2   : > { %p413_p0 = por %p412_p9, %p411_p10 }
  0xd4   : > { %p414_p1 = pnand %p413_p0, %p407_p8 }
  0xd6   : > { %417 = shalt.err (!%p414_p1)
}
  0xd7   : > { %s465_s16 = smov 128   ;;  %s466_s17 = smov 8  }
  0xd8   : > { %301 = dma.vmem_to_hbm [thread:$0]  (%p667_p13), %s610_s23, 512, %s615_s4, %s191_s5, %s465_s16, %s465_s16, %s466_s17  }
  0xd9 PF: > { %p312_p11 = scmp.ge.s32.totalorder %s458_s22, 2  ;;  %s220_s29 = sand.u32 1, %s446_s19  }
  0xda   : > { %p668_p12 = scmp.ne.s32.totalorder %s665_s3, 0  ;;  %s221_s18 = scalar_lea.sflag [#allocation6], %s220_s29 }
  0xdc   : > { %p308_p2 = pnand %p312_p11, %p668_p12 }
  0xde   : > { %441 = dma.done.wait (!%p308_p2), %s221_s18, 512  }
  0xdf   : > { %443 = vsyncadd (!%p308_p2), %s221_s18, 4294966784  ;;  %p19_p4 = scmp.ge.s32.totalorder %s519_s24, 6   ;;  %s669_s19 = smov %s450_s20 }
  0xe0   : > { %s670_s20 = smov %s454_s21  ;;  %s671_s21 = smov %s531_s27 }
  0xe1   : > { %s672_s22 = smov %s519_s24  ;;  %21 = sbr.rel (!%p19_p4) target bundleno = 17 (0x11), region = 69 }
  0xe8   :  { %226 = vsyncpa [#allocation5], 1 }
  0xe9   :  { %228 = vsyncpa [#allocation5 + $0x1], 1 }
  0xea   :  { %229 = vsyncpa [#allocation6], 1 }
  0xeb   :  { %231 = vsyncpa [#allocation6 + $0x1], 1 }

</bundles_post_ra>
